<compile_context>
chip_gen: v6e
topology: v6e:2x2x1
jax: 0.10.0
libtpu: 0.0.40
codegen_flags: <defaults>
</compile_context>

<pallas_src>
import jax
import jax.numpy as jnp
from jax.experimental import pallas as pl
from jax.experimental.pallas import tpu as pltpu


def _round_up(x, m):
    return ((x + m - 1) // m) * m


def dqn_kernel(x_ref, w1_ref, b1_ref, w2_ref, b2_ref, w3_ref, b3_ref, o_ref):
    # Cast the activation tile to bf16 in-register (x stays f32 in HBM).
    x = x_ref[...].astype(jnp.bfloat16)
    # fc1 + relu1 : bf16 matmul, f32 accumulate, f32 bias/ReLU, bf16 activation.
    h1 = jnp.dot(x, w1_ref[...], preferred_element_type=jnp.float32)
    h1 = jnp.maximum(h1 + b1_ref[...], 0.0).astype(jnp.bfloat16)
    # fc2 + relu2
    h2 = jnp.dot(h1, w2_ref[...], preferred_element_type=jnp.float32)
    h2 = jnp.maximum(h2 + b2_ref[...], 0.0).astype(jnp.bfloat16)
    # fc3 (no activation), narrow (unpadded) f32 store.
    out = jnp.dot(h2, w3_ref[...], preferred_element_type=jnp.float32) + b3_ref[...]
    o_ref[...] = out.astype(o_ref.dtype)


def prepare_params(params):
    """One-time preprocessing: bf16 MXU weights, f32 (1, out) biases.

    Call once (e.g. after training / at agent construction); do NOT call per
    forward.  Weights are already stored transposed (in_features, out_features).
    """
    return {
        "w1": params["w1"].astype(jnp.bfloat16),
        "b1": params["b1"].reshape(1, -1).astype(jnp.float32),
        "w2": params["w2"].astype(jnp.bfloat16),
        "b2": params["b2"].reshape(1, -1).astype(jnp.float32),
        "w3": params["w3"].astype(jnp.bfloat16),
        "b3": params["b3"].reshape(1, -1).astype(jnp.float32),
    }


def _choose_batch_tile(B, cap=2048, min_grid_steps=2):
    """Batch tile: multiple of 8, <= cap, aiming for >= min_grid_steps steps
    (so both v7x TensorCores get work) without padding tiny batches."""
    if B <= 8:
        return 8
    tb = _round_up(pl.cdiv(B, min_grid_steps), 8)
    return max(8, min(cap, tb))


def dqn_forward(x, prepared, *, batch_tile_cap=2048):
    """x: (B, state_size) f32.  prepared: output of prepare_params().

    Returns (B, action_size) f32.  Only the batch dim is (possibly) padded;
    feature dims are streamed at their natural widths.
    """
    B, S = x.shape
    H = prepared["w1"].shape[1]
    A = prepared["w3"].shape[1]
    assert prepared["w1"].shape == (S, H)
    assert prepared["w2"].shape == (H, H)
    assert prepared["w3"].shape == (H, A)

    TB = _choose_batch_tile(B, cap=batch_tile_cap)
    Bp = _round_up(B, TB)
    xp = x if Bp == B else jnp.pad(x, ((0, Bp - B), (0, 0)))

    grid = (Bp // TB,)

    out = pl.pallas_call(
        dqn_kernel,
        out_shape=jax.ShapeDtypeStruct((Bp, A), jnp.float32),
        grid=grid,
        in_specs=[
            # batch-tiled activations (last dim = full S, no padding)
            pl.BlockSpec((TB, S), lambda i: (i, 0)),
            # weights / biases: grid-invariant, resident in VMEM
            pl.BlockSpec((S, H), lambda i: (0, 0)),
            pl.BlockSpec((1, H), lambda i: (0, 0)),
            pl.BlockSpec((H, H), lambda i: (0, 0)),
            pl.BlockSpec((1, H), lambda i: (0, 0)),
            pl.BlockSpec((H, A), lambda i: (0, 0)),
            pl.BlockSpec((1, A), lambda i: (0, 0)),
        ],
        out_specs=pl.BlockSpec((TB, A), lambda i: (i, 0)),
        compiler_params=pltpu.CompilerParams(
            dimension_semantics=("parallel",),
        ),
    )(xp, prepared["w1"], prepared["b1"], prepared["w2"], prepared["b2"],
      prepared["w3"], prepared["b3"])

    return out[:B]


def init_dqn_params(key, state_size, action_size, hidden_size=128):
    """PyTorch-nn.Linear-style init (U[-1/sqrt(fan_in), +1/sqrt(fan_in)]).
    Weights stored transposed: (in_features, out_features)."""
    keys = jax.random.split(key, 6)

    def linear(kw, kb, fan_in, fan_out):
        bound = 1.0 / jnp.sqrt(jnp.float32(fan_in))
        w = jax.random.uniform(kw, (fan_in, fan_out), jnp.float32, -bound, bound)
        b = jax.random.uniform(kb, (1, fan_out), jnp.float32, -bound, bound)
        return w, b

    w1, b1 = linear(keys[0], keys[1], state_size, hidden_size)
    w2, b2 = linear(keys[2], keys[3], hidden_size, hidden_size)
    w3, b3 = linear(keys[4], keys[5], hidden_size, action_size)
    return {"w1": w1, "b1": b1, "w2": w2, "b2": b2, "w3": w3, "b3": b3}


def ref_forward(x, params):
    """Pure-JAX reference mirroring the kernel math (bf16 matmuls, f32 acc,
    f32 bias/ReLU epilogue)."""
    def bdot(a, b):
        return jnp.dot(a.astype(jnp.bfloat16), b.astype(jnp.bfloat16),
                       preferred_element_type=jnp.float32)

    h1 = jnp.maximum(bdot(x, params["w1"]) + params["b1"], 0.0)
    h2 = jnp.maximum(bdot(h1, params["w2"]) + params["b2"], 0.0)
    return bdot(h2, params["w3"]) + params["b3"]


if __name__ == "__main__":
    batch = 8
    state_size = 16
    action_size = 4
    hidden_size = 32

    key = jax.random.PRNGKey(0)
    pkey, xkey = jax.random.split(key)
    params = init_dqn_params(pkey, state_size, action_size, hidden_size)
    prepared = prepare_params(params)          # one-time weight preprocessing
    x = jax.random.normal(xkey, (batch, state_size), jnp.float32)

    out = dqn_forward(x, prepared)
    out = jax.block_until_ready(out)

    ref = ref_forward(x, params)
    assert out.shape == (batch, action_size)
    assert jnp.allclose(out, ref, atol=2e-4, rtol=2e-4), (
        f"max abs err {jnp.max(jnp.abs(out - ref))}")

    print("KERNEL_OK")
</pallas_src>

<mosaic_0001>
module attributes {stable_mosaic.version = 11 : i64} {
  func.func @dqn_kernel(%arg0: i32, %arg1: memref<8x16xf32, #tpu.memory_space<vmem>>, %arg2: memref<16x32xbf16, #tpu.memory_space<vmem>>, %arg3: memref<1x32xf32, #tpu.memory_space<vmem>>, %arg4: memref<32x32xbf16, #tpu.memory_space<vmem>>, %arg5: memref<1x32xf32, #tpu.memory_space<vmem>>, %arg6: memref<32x4xbf16, #tpu.memory_space<vmem>>, %arg7: memref<1x4xf32, #tpu.memory_space<vmem>>, %arg8: memref<8x4xf32, #tpu.memory_space<vmem>>) attributes {dimension_semantics = [#tpu.dimension_semantics<parallel>], iteration_bounds = array<i64: 1>, scalar_prefetch = 0 : i64, scratch_operands = 0 : i64, tpu.core_type = #tpu.core_type<tc>, window_params = [{transform_indices = @transform_0, window_bounds = array<i64: 8, 16>}, {pipeline_mode = #tpu.pipeline_mode<synchronous>, transform_indices = @transform_1, window_bounds = array<i64: 16, 32>}, {pipeline_mode = #tpu.pipeline_mode<synchronous>, transform_indices = @transform_2, window_bounds = array<i64: 1, 32>}, {pipeline_mode = #tpu.pipeline_mode<synchronous>, transform_indices = @transform_3, window_bounds = array<i64: 32, 32>}, {pipeline_mode = #tpu.pipeline_mode<synchronous>, transform_indices = @transform_4, window_bounds = array<i64: 1, 32>}, {pipeline_mode = #tpu.pipeline_mode<synchronous>, transform_indices = @transform_5, window_bounds = array<i64: 32, 4>}, {pipeline_mode = #tpu.pipeline_mode<synchronous>, transform_indices = @transform_6, window_bounds = array<i64: 1, 4>}, {transform_indices = @transform_7, window_bounds = array<i64: 8, 4>}]} {
    %c0 = arith.constant 0 : index
    %c0_0 = arith.constant 0 : index
    %0 = vector.load %arg1[%c0, %c0_0] : memref<8x16xf32, #tpu.memory_space<vmem>>, vector<8x16xf32>
    %1 = arith.truncf %0 : vector<8x16xf32> to vector<8x16xbf16>
    %c0_1 = arith.constant 0 : index
    %c0_2 = arith.constant 0 : index
    %2 = vector.load %arg2[%c0_1, %c0_2] : memref<16x32xbf16, #tpu.memory_space<vmem>>, vector<16x32xbf16>
    %cst = arith.constant dense<0.000000e+00> : vector<8x32xf32>
    %3 = tpu.matmul %1, %2, %cst {dimension_numbers = #tpu.dot_dimension_numbers<[1], [0], [0], [1], [0, 0, 1, 1], [], []>} : vector<8x16xbf16>, vector<16x32xbf16>, vector<8x32xf32> -> vector<8x32xf32>
    %c0_3 = arith.constant 0 : index
    %c0_4 = arith.constant 0 : index
    %4 = vector.load %arg3[%c0_3, %c0_4] : memref<1x32xf32, #tpu.memory_space<vmem>>, vector<1x32xf32>
    %5 = vector.broadcast %4 : vector<1x32xf32> to vector<8x32xf32>
    %6 = arith.addf %3, %5 : vector<8x32xf32>
    %cst_5 = arith.constant 0.000000e+00 : f32
    %7 = vector.broadcast %cst_5 : f32 to vector<8x32xf32>
    %8 = arith.maximumf %6, %7 : vector<8x32xf32>
    %9 = arith.truncf %8 : vector<8x32xf32> to vector<8x32xbf16>
    %c0_6 = arith.constant 0 : index
    %c0_7 = arith.constant 0 : index
    %10 = vector.load %arg4[%c0_6, %c0_7] : memref<32x32xbf16, #tpu.memory_space<vmem>>, vector<32x32xbf16>
    %cst_8 = arith.constant dense<0.000000e+00> : vector<8x32xf32>
    %11 = tpu.matmul %9, %10, %cst_8 {dimension_numbers = #tpu.dot_dimension_numbers<[1], [0], [0], [1], [0, 0, 1, 1], [], []>} : vector<8x32xbf16>, vector<32x32xbf16>, vector<8x32xf32> -> vector<8x32xf32>
    %c0_9 = arith.constant 0 : index
    %c0_10 = arith.constant 0 : index
    %12 = vector.load %arg5[%c0_9, %c0_10] : memref<1x32xf32, #tpu.memory_space<vmem>>, vector<1x32xf32>
    %13 = vector.broadcast %12 : vector<1x32xf32> to vector<8x32xf32>
    %14 = arith.addf %11, %13 : vector<8x32xf32>
    %cst_11 = arith.constant 0.000000e+00 : f32
    %15 = vector.broadcast %cst_11 : f32 to vector<8x32xf32>
    %16 = arith.maximumf %14, %15 : vector<8x32xf32>
    %17 = arith.truncf %16 : vector<8x32xf32> to vector<8x32xbf16>
    %c0_12 = arith.constant 0 : index
    %c0_13 = arith.constant 0 : index
    %18 = vector.load %arg6[%c0_12, %c0_13] : memref<32x4xbf16, #tpu.memory_space<vmem>>, vector<32x4xbf16>
    %cst_14 = arith.constant dense<0.000000e+00> : vector<8x4xf32>
    %19 = tpu.matmul %17, %18, %cst_14 {dimension_numbers = #tpu.dot_dimension_numbers<[1], [0], [0], [1], [0, 0, 1, 1], [], []>} : vector<8x32xbf16>, vector<32x4xbf16>, vector<8x4xf32> -> vector<8x4xf32>
    %c0_15 = arith.constant 0 : index
    %c0_16 = arith.constant 0 : index
    %20 = vector.load %arg7[%c0_15, %c0_16] : memref<1x4xf32, #tpu.memory_space<vmem>>, vector<1x4xf32>
    %21 = vector.broadcast %20 : vector<1x4xf32> to vector<8x4xf32>
    %22 = arith.addf %19, %21 : vector<8x4xf32>
    %c0_17 = arith.constant 0 : index
    %c0_18 = arith.constant 0 : index
    %23 = vector.load %arg8[%c0_17, %c0_18] : memref<8x4xf32, #tpu.memory_space<vmem>>, vector<8x4xf32>
    tpu.vector_store %arg8[%c0_17, %c0_18], %22 {strides = array<i32>} : memref<8x4xf32, #tpu.memory_space<vmem>>, vector<8x4xf32>,
    return
  }
  func.func @transform_0(%arg0: i32) -> (i32, i32) {
    %c0_i32 = arith.constant 0 : i32
    %c0_i32_0 = arith.constant 0 : i32
    return %arg0, %c0_i32 : i32, i32
  }
  func.func @transform_1(%arg0: i32) -> (i32, i32) {
    %c0_i32 = arith.constant 0 : i32
    %c0_i32_0 = arith.constant 0 : i32
    %c0_i32_1 = arith.constant 0 : i32
    return %c0_i32, %c0_i32_0 : i32, i32
  }
  func.func @transform_2(%arg0: i32) -> (i32, i32) {
    %c0_i32 = arith.constant 0 : i32
    %c0_i32_0 = arith.constant 0 : i32
    %c0_i32_1 = arith.constant 0 : i32
    return %c0_i32, %c0_i32_0 : i32, i32
  }
  func.func @transform_3(%arg0: i32) -> (i32, i32) {
    %c0_i32 = arith.constant 0 : i32
    %c0_i32_0 = arith.constant 0 : i32
    %c0_i32_1 = arith.constant 0 : i32
    return %c0_i32, %c0_i32_0 : i32, i32
  }
  func.func @transform_4(%arg0: i32) -> (i32, i32) {
    %c0_i32 = arith.constant 0 : i32
    %c0_i32_0 = arith.constant 0 : i32
    %c0_i32_1 = arith.constant 0 : i32
    return %c0_i32, %c0_i32_0 : i32, i32
  }
  func.func @transform_5(%arg0: i32) -> (i32, i32) {
    %c0_i32 = arith.constant 0 : i32
    %c0_i32_0 = arith.constant 0 : i32
    %c0_i32_1 = arith.constant 0 : i32
    return %c0_i32, %c0_i32_0 : i32, i32
  }
  func.func @transform_6(%arg0: i32) -> (i32, i32) {
    %c0_i32 = arith.constant 0 : i32
    %c0_i32_0 = arith.constant 0 : i32
    %c0_i32_1 = arith.constant 0 : i32
    return %c0_i32, %c0_i32_0 : i32, i32
  }
  func.func @transform_7(%arg0: i32) -> (i32, i32) {
    %c0_i32 = arith.constant 0 : i32
    %c0_i32_0 = arith.constant 0 : i32
    return %arg0, %c0_i32 : i32, i32
  }
}

</mosaic_0001>

<bundles_post_ra>
// kernel: tpu_custom_call.1
= control target key start
LH: loop header
LB: loop body
LE: loop exit
PB: predicated region body
PF: predicated region fallthrough
CT: control target
= control target key end

     0   :  { %12 = vsyncpa [#allocation3], 0  ;;  %s431_s0 = inlined_call_operand.hbm [shape: f32[8,16], index: 0, kind: input, shape index: {}]   ;;  %s432_s1 = inlined_call_operand.hbm [shape: bf16[16,32], index: 1, kind: input, shape index: {}]   ;;  %s433_s2 = inlined_call_operand.vmem [shape: f32[1,32], index: 2, kind: input, shape index: {}]   ;;  %s434_s3 = inlined_call_operand.vmem [shape: bf16[32,32], index: 3, kind: input, shape index: {}]   ;;  %s435_s4 = inlined_call_operand.vmem [shape: f32[1,32], index: 4, kind: input, shape index: {}]   ;;  %s436_s5 = inlined_call_operand.vmem [shape: bf16[32,4], index: 5, kind: input, shape index: {}]   ;;  %s437_s6 = inlined_call_operand.vmem [shape: f32[1,4], index: 6, kind: input, shape index: {}]   ;;  %s438_s7 = inlined_call_operand.vmem [shape: f32[8,4], index: 7, kind: output, shape index: {}]  }
   0x1   :  { %13 = vsyncpa [#allocation5], 0  ;;  %s355_s24 = smov [#allocation2]   ;;  %s356_s26 = smov [#allocation4]  }
   0x2   :  { %s20_s25 = sshll.u32 %s355_s24, 4  ;;  %s29_s27 = sshll.u32 %s356_s26, 4  ;;  %s21_s25 = int_to_ptr.vmem [resolvable:$true] %s20_s25  ;;  %s30_s27 = int_to_ptr.vmem [resolvable:$true] %s29_s27 }
   0x3   :  { %s319_s28 = scalar_lea.vmem %s21_s25, 128  ;;  %p324_p1 = scmp.lt.s32.totalorder %s21_s25, %s21_s25 }
   0x4   :  { %p320_p0 = scmp.ne.s32.totalorder %s21_s25, %s319_s28  ;;  %p325_p2 = scmp.lt.s32.totalorder %s319_s28, %s319_s28 }
   0x6   :  { %p326_p3 = por %p325_p2, %p324_p1 }
   0x8   :  { %p327_p4 = pnand %p326_p3, %p320_p0 }
   0xa   :  { %330 = shalt.err (!%p327_p4)
}
   0xb   :  { %23 = dma.hbm_to_vmem [thread:$0]  %s431_s0, 128, %s21_s25, [#allocation3]  }
   0xc   :  { %s339_s8 = scalar_lea.vmem %s30_s27, 128  ;;  %p344_p6 = scmp.lt.s32.totalorder %s30_s27, %s30_s27 }
   0xd   :  { %p340_p5 = scmp.ne.s32.totalorder %s30_s27, %s339_s8  ;;  %p345_p7 = scmp.lt.s32.totalorder %s339_s8, %s339_s8 }
   0xf   :  { %p346_p8 = por %p345_p7, %p344_p6 }
  0x11   :  { %p347_p9 = pnand %p346_p8, %p340_p5 }
  0x13   :  { %350 = shalt.err (!%p347_p9)
}
  0x14   :  { %s357_s9 = smov 64   ;;  %s358_s10 = smov 4  }
  0x15   :  { %35 = dma.hbm_to_vmem [thread:$0]  %s432_s1, 128, %s30_s27, [#allocation5], %s357_s9, %s357_s9, %s358_s10  }
  0x16   :  { %351 = dma.done.wait [#allocation3], 128  }
  0x17   :  { %352 = vsyncadd [#allocation3], 4294967168 }
  0x18   :  { %353 = dma.done.wait [#allocation5], 128  }
  0x19   :  { %354 = vsyncadd [#allocation5], 4294967168  ;;  %v359_v0 = vmov 0.0   ;;  %vm360_vm0 = vmmov 0   ;;  %v306_v1 = vld [vmem:[#allocation4] sm:$0xff]   ;;  %v53_v2 = vld [vmem:[#allocation2] sm:$0xff] }
  0x1a   :  { %278 = vmatprep.subr.bf16.mxu0 %v359_v0  ;;  %280 = vmatprep.mubr.msk.bf16.mxu0 %vm360_vm0, %v359_v0  ;;  %vm70_vm1 = vcmask 130048   ;;  %v54_v3 = vpack.c.bf16 %v53_v2, %v53_v2  ;;  %v307_v4 = vld [vmem:[%s434_s3 + $0x8] sm:$0xff]   ;;  %v308_v5 = vld [vmem:[%s434_s3] sm:$0xff]   ;;  %vm139_vm2 = vcmask 261120   ;;  %vm251_vm3 = vcmask 31744  }
  0x1b   :  { %284 = vmatprep.subr.bf16.mxu1 %v359_v0  ;;  %288 = vmatprep.mubr.msk.bf16.mxu1 %vm360_vm0, %v359_v0  ;;  %v309_v6 = vld [vmem:[%s436_s5 + $0x8] sm:$0xff]   ;;  %v259_v7 = vld [vmem:[%s433_s2] ss:$0 sm:$0xff] }
  0x1c   :  { %279 = vmatpush3.bf16.msra.mxu0 %v306_v1  ;;  %285 = vmatpush3.bf16.msra.mxu1 %v307_v4  ;;  %v310_v15 = vld [vmem:[%s436_s5] sm:$0xff]  }
  0x1d   :  { %292 = vmatprep.subr.bf16.mxu0 %v359_v0  ;;  %286 = vmatprep.subr.bf16.mxu1 %v359_v0  ;;  %v262_v16 = vld [vmem:[%s435_s4] ss:$0 sm:$0xff] }
  0x1e   :  { %v266_v24 = vld [vmem:[%s437_s6] ss:$0 sm:$0xff] }
  0x1f   :  { %281 = vmatmul.mubr.msk.bf16.vlgmr.msra.gmra.mxu0 %vm70_vm1, %v54_v3 }
  0x20   :  { %296 = vmatprep.mubr.msk.bf16.mxu0 %vm360_vm0, %v359_v0  ;;  %287 = vmatpush3.bf16.msra.mxu1 %v308_v5 }
  0x21   :  { %293 = vmatpush3.bf16.msra.mxu0 %v309_v6 }
  0x22   :  { %294 = vmatprep.subr.bf16.mxu0 %v359_v0 }
  0x25   :  { %295 = vmatpush3.bf16.msra.mxu0 %v310_v15 }
  0xdf   :  { %v108_v8 = vpop.f32.mrf.mxu0 }
  0xe0   :  { %v109_v9 = vadd.f32 %v259_v7, %v108_v8 }
  0xe1   :  { %v282_v10 = vpop.f32.mrf.mxu0 }
  0xe2   :  { %v114_v11 = vmax.f32 %v109_v9, 0.0 }
  0xe3   :  { %v111_v12 = vpop.f32.mrf.mxu0 }
  0xe4   :  { %v115_v13 = vpack.c.bf16 %v114_v11, %v114_v11 }
  0xe5   :  { %v283_v14 = vpop.f32.mrf.mxu0 }
  0xe6   :  { %289 = vmatmul.mubr.msk.bf16.vlgmr.msra.gmra.mxu1 %vm139_vm2, %v115_v13 }
 0x1a6   :  { %v177_v17 = vpop.f32.mrf.mxu1 }
 0x1a7   :  { %v178_v18 = vadd.f32 %v262_v16, %v177_v17 }
 0x1a8   :  { %v290_v19 = vpop.f32.mrf.mxu1 }
 0x1a9   :  { %v183_v20 = vmax.f32 %v178_v18, 0.0 }
 0x1aa   :  { %v180_v21 = vpop.f32.mrf.mxu1 }
 0x1ab   :  { %v184_v22 = vpack.c.bf16 %v183_v20, %v183_v20 }
 0x1ac   :  { %v291_v23 = vpop.f32.mrf.mxu1 }
 0x1ad   :  { %297 = vmatmul.mubr.msk.bf16.vlgmr.msra.gmra.mxu0 %vm139_vm2, %v184_v22 }
 0x26d   :  { %v245_v25 = vpop.f32.mrf.mxu0 }
 0x26e   :  { %v246_v26 = vadd.f32 %v266_v24, %v245_v25 }
 0x26f   :  { %v298_v27 = vpop.f32.mrf.mxu0 }
 0x270   :  { %252 = vst.msk [vmem:[%s438_s7] sm:$0xff] %vm251_vm3, %v246_v26 }
 0x271   :  { %v248_v28 = vpop.f32.mrf.mxu0 }
 0x273   :  { %v299_v29 = vpop.f32.mrf.mxu0 }
 0x274   :  { %257 = vsyncpa [#allocation3], 1 }
 0x275   :  { %258 = vsyncpa [#allocation5], 1 }

</bundles_post_ra>
